<compile_context>
chip_gen: v5e
topology: v5e:2x2
jax: 0.10.0
libtpu: 0.0.40
codegen_flags: <defaults>
</compile_context>

<pallas_src>
import functools
import math

import jax
import jax.numpy as jnp
from jax.experimental import pallas as pl
from jax.experimental.pallas import tpu as pltpu


def _lse_pool_kernel(x_ref, w_ref, b_ref, o_ref, m_sc, l_sc, *,
                     r, log_hw, hw_total, mask_last):
    # x_ref: (TB, Cin, THW) block  (channels on sublanes, spatial on lanes)
    # w_ref: (Cout, Cin)   b_ref: (Cout, 1)   o_ref: (TB, Cout, 1)
    # m_sc / l_sc: (TB, Cout, 1) f32 running max / rescaled running sum-of-exp
    hw = pl.program_id(1)

    @pl.when(hw == 0)
    def _init():
        m_sc[...] = jnp.full_like(m_sc, -jnp.inf)
        l_sc[...] = jnp.zeros_like(l_sc)

    tb = x_ref.shape[0]
    # 1x1 conv == per-batch channel matmul on the MXU; spatial stays on lanes.
    if tb == 1:
        y = jnp.dot(w_ref[...], x_ref[0],
                    preferred_element_type=jnp.float32)[None]           # (1, Cout, THW)
    else:
        w_b = jnp.broadcast_to(w_ref[...][None], (tb,) + w_ref.shape)   # (TB, Cout, Cin)
        y = jnp.einsum("boc,bcl->bol", w_b, x_ref[...],
                       preferred_element_type=jnp.float32)              # (TB, Cout, THW)

    if mask_last:
        # cdiv spatial grid: padded lanes of the last tile must not pollute the
        # reduction. -inf feeds the max; exp(r*(-inf - m)) == 0 feeds the sum.
        lane = jax.lax.broadcasted_iota(jnp.int32, y.shape, 2)
        valid = (hw * y.shape[2] + lane) < hw_total
        y = jnp.where(valid, y, -jnp.inf)

    # Online (streaming) log-sum-exp over the spatial axis.
    m_prev = m_sc[...]
    m_new = jnp.maximum(m_prev, jnp.max(y, axis=-1, keepdims=True))     # (TB, Cout, 1)
    alpha = jnp.exp(r * (m_prev - m_new))                               # rescale old sum
    p = jnp.exp(r * (y - m_new))                                        # (TB, Cout, THW)
    l_sc[...] = alpha * l_sc[...] + jnp.sum(p, axis=-1, keepdims=True)
    m_sc[...] = m_new

    @pl.when(hw == pl.num_programs(1) - 1)
    def _finalize():
        # (1/r) * log(mean exp(r*(y - m))) + m, then + bias (exact: LSE pooling
        # is shift-equivariant per channel). Mean folded in as log(HW)/r.
        pooled = (jnp.log(l_sc[...]) - log_hw) * (1.0 / r) + m_sc[...] + b_ref[...]
        o_ref[...] = pooled.astype(o_ref.dtype)


def _tile_budget_bytes():
    """Per-block byte budget for the x input, derived from the chip generation."""
    try:
        vmem = pltpu.get_tpu_info().vmem_capacity_bytes
    except Exception:
        vmem = 128 << 20
    # v7x-class (64 MiB VMEM, ~3.2 TB/s HBM): want ~8 MiB blocks so the fixed
    # ~0.35 us/step grid overhead is <~10% of each block's DMA time.
    # v5e/v6e (128 MiB VMEM, slower HBM): 4 MiB blocks already hide the overhead.
    if vmem <= (64 << 20):
        return 8 << 20
    return 4 << 20


def _pick_tiles(batch, cin, hw, itemsize, budget_bytes):
    """Pick (TB, THW) for the (TB, Cin, THW) x block under the byte budget."""
    row_bytes = cin * hw * itemsize                    # one full batch element
    if row_bytes >= budget_bytes:
        tb = 1
        max_lanes = budget_bytes // (cin * itemsize)
        if hw <= max_lanes:
            thw = hw                                   # full extent (ragged HW allowed)
        else:
            thw = max((max_lanes // 128) * 128, 128)   # lane-aligned, >=128 floor
    else:
        # Batch-tile to amortize per-grid-step overhead on small feature maps.
        tb = max(1, min(batch, budget_bytes // row_bytes, 128))
        thw = hw
    return tb, thw


def logsumexp_pool(x_nchw, weight, bias, *, r=10.0, support_background=False):
    """x_nchw: (B, Cin, H, W); weight: (Cout, Cin, 1, 1); bias: (Cout,)."""
    B, Cin, H, W = x_nchw.shape
    Cout = weight.shape[0]
    HW = H * W

    # Consume x as (B, Cin, HW) in its native dtype (reshape is layout-free).
    # bf16 inputs halve HBM traffic; accumulation / post-matmul math stay f32.
    x = x_nchw.reshape(B, Cin, HW)
    w = weight.reshape(Cout, Cin).astype(x.dtype)      # (Cout, Cin)
    b = bias.reshape(Cout, 1).astype(jnp.float32)      # (Cout, 1), added post-pool

    itemsize = x.dtype.itemsize
    budget = _tile_budget_bytes()
    tb, thw = _pick_tiles(B, Cin, HW, itemsize, budget)
    n_b = pl.cdiv(B, tb)
    n_hw = pl.cdiv(HW, thw)
    mask_last = (HW % thw) != 0

    # TODO(synk): the PyTorch module also stashes self.cams = conv(x).detach();
    # the full (B, Cout, H, W) map is not materialized here (logits only).
    # TODO(synk): for B==1 on v7x, split the spatial reduction across the two
    # TensorCores (partial (m, l) outputs + logaddexp combine in the wrapper).

    kernel = functools.partial(_lse_pool_kernel, r=float(r),
                               log_hw=float(math.log(HW)),
                               hw_total=HW, mask_last=mask_last)

    cost = pl.CostEstimate(
        flops=2 * B * Cout * Cin * HW,
        transcendentals=B * Cout * HW,
        bytes_accessed=B * Cin * HW * itemsize + Cout * Cin * itemsize + B * Cout * 4,
    )

    out = pl.pallas_call(
        kernel,
        out_shape=jax.ShapeDtypeStruct((B, Cout, 1), jnp.float32),
        grid_spec=pltpu.PrefetchScalarGridSpec(
            num_scalar_prefetch=0,
            grid=(n_b, n_hw),                          # spatial reduction axis last
            in_specs=[
                pl.BlockSpec((tb, Cin, thw), lambda i, j: (i, 0, j)),
                pl.BlockSpec((Cout, Cin), lambda i, j: (0, 0)),
                pl.BlockSpec((Cout, 1), lambda i, j: (0, 0)),
            ],
            out_specs=pl.BlockSpec((tb, Cout, 1), lambda i, j: (i, 0, 0)),
            scratch_shapes=[
                pltpu.VMEM((tb, Cout, 1), jnp.float32),    # running max
                pltpu.VMEM((tb, Cout, 1), jnp.float32),    # running rescaled sum
            ],
        ),
        compiler_params=pltpu.CompilerParams(
            dimension_semantics=("parallel", "arbitrary"),
            vmem_limit_bytes=32 * 1024 * 1024,
        ),
        cost_estimate=cost,
    )(x, w, b)

    logits = out.reshape(B, Cout)
    # correct_cl_logits
    if support_background:
        logits = logits[:, 1:]
    return logits


def _reference(x_nchw, weight, bias, *, r=10.0, support_background=False):
    # Pure-JAX reference mirroring the PyTorch forward, for validation.
    B, Cin, H, W = x_nchw.shape
    Cout = weight.shape[0]
    y = jnp.einsum("bchw,oc->bohw", x_nchw, weight.reshape(Cout, Cin))
    y = y + bias[None, :, None, None]                                   # (B, Cout, H, W)
    m = jnp.max(y, axis=(2, 3), keepdims=True)
    out = jnp.log(jnp.mean(jnp.exp(r * (y - m)), axis=(2, 3), keepdims=True)) / r + m
    logits = out.reshape(B, Cout)
    if support_background:
        logits = logits[:, 1:]
    return logits


if __name__ == "__main__":
    key = jax.random.PRNGKey(0)
    k_x, k_w, k_b = jax.random.split(key, 3)

    # Small shapes consistent with the module: B=2, in_channels=4, H=W=16,
    # classes=3, support_background=True -> conv out_channels = 4.
    B, Cin, H, W = 2, 4, 16, 16
    classes = 3
    support_background = True
    Cout = classes + 1 if support_background else classes
    r = 10.0

    x = jax.random.normal(k_x, (B, Cin, H, W), dtype=jnp.float32)
    # Deterministic synthetic conv params (nn.Conv2d(in_channels, Cout, kernel_size=1)).
    weight = 0.1 * jax.random.normal(k_w, (Cout, Cin, 1, 1), dtype=jnp.float32)
    bias = 0.05 * jax.random.normal(k_b, (Cout,), dtype=jnp.float32)

    logits = logsumexp_pool(x, weight, bias, r=r,
                            support_background=support_background)
    logits = jax.block_until_ready(logits)

    ref = _reference(x, weight, bias, r=r, support_background=support_background)
    assert logits.shape == (B, classes)
    assert jnp.allclose(logits, ref, atol=1e-4, rtol=1e-4)

    print("KERNEL_OK")
</pallas_src>

<mosaic_0001>
module attributes {stable_mosaic.version = 11 : i64} {
  func.func @_lse_pool_kernel(%arg0: i32, %arg1: i32, %arg2: memref<2x4x256xf32, #tpu.memory_space<vmem>>, %arg3: memref<4x4xf32, #tpu.memory_space<vmem>>, %arg4: memref<4x1xf32, #tpu.memory_space<vmem>>, %arg5: memref<2x4x1xf32, #tpu.memory_space<vmem>>, %arg6: memref<2x4x1xf32, #tpu.memory_space<vmem>>, %arg7: memref<2x4x1xf32, #tpu.memory_space<vmem>>) attributes {dimension_semantics = [#tpu.dimension_semantics<parallel>, #tpu.dimension_semantics<arbitrary>], iteration_bounds = array<i64: 1, 1>, scalar_prefetch = 0 : i64, scratch_operands = 2 : i64, tpu.core_type = #tpu.core_type<tc>, window_params = [{transform_indices = @transform_0, window_bounds = array<i64: 2, 4, 256>}, {pipeline_mode = #tpu.pipeline_mode<synchronous>, transform_indices = @transform_1, window_bounds = array<i64: 4, 4>}, {pipeline_mode = #tpu.pipeline_mode<synchronous>, transform_indices = @transform_2, window_bounds = array<i64: 4, 1>}, {transform_indices = @transform_3, window_bounds = array<i64: 2, 4, 1>}]} {
    %c0_i32 = arith.constant 0 : i32
    %0 = arith.cmpi eq, %arg1, %c0_i32 : i32
    %1 = arith.extui %0 : i1 to i32
    %c0_i32_0 = arith.constant 0 : i32
    %2 = arith.cmpi ne, %1, %c0_i32_0 : i32
    scf.if %2 {
      %cst_23 = arith.constant 0xFF800000 : f32
      %32 = vector.broadcast %cst_23 : f32 to vector<2x4x1xf32>
      %c0_24 = arith.constant 0 : index
      %c0_25 = arith.constant 0 : index
      %c0_26 = arith.constant 0 : index
      %33 = vector.load %arg6[%c0_24, %c0_25, %c0_26] : memref<2x4x1xf32, #tpu.memory_space<vmem>>, vector<2x4x1xf32>
      tpu.vector_store %arg6[%c0_24, %c0_25, %c0_26], %32 {strides = array<i32>} : memref<2x4x1xf32, #tpu.memory_space<vmem>>, vector<2x4x1xf32>,
      %cst_27 = arith.constant 0.000000e+00 : f32
      %34 = vector.broadcast %cst_27 : f32 to vector<2x4x1xf32>
      %c0_28 = arith.constant 0 : index
      %c0_29 = arith.constant 0 : index
      %c0_30 = arith.constant 0 : index
      %35 = vector.load %arg7[%c0_28, %c0_29, %c0_30] : memref<2x4x1xf32, #tpu.memory_space<vmem>>, vector<2x4x1xf32>
      tpu.vector_store %arg7[%c0_28, %c0_29, %c0_30], %34 {strides = array<i32>} : memref<2x4x1xf32, #tpu.memory_space<vmem>>, vector<2x4x1xf32>,
    } else {
    }
    %c0 = arith.constant 0 : index
    %c0_1 = arith.constant 0 : index
    %3 = vector.load %arg3[%c0, %c0_1] : memref<4x4xf32, #tpu.memory_space<vmem>>, vector<4x4xf32>
    %4 = vector.shape_cast %3 : vector<4x4xf32> to vector<1x4x4xf32>
    %5 = vector.shape_cast %4 : vector<1x4x4xf32> to vector<1x4x4xf32>
    %6 = vector.broadcast %5 : vector<1x4x4xf32> to vector<2x4x4xf32>
    %c0_2 = arith.constant 0 : index
    %c0_3 = arith.constant 0 : index
    %c0_4 = arith.constant 0 : index
    %7 = vector.load %arg2[%c0_2, %c0_3, %c0_4] : memref<2x4x256xf32, #tpu.memory_space<vmem>>, vector<2x4x256xf32>
    "tpu.trace_start"() <{level = 10 : i32, message = "boc,bcl->bol"}> : () -> ()
    %cst = arith.constant dense<0.000000e+00> : vector<2x4x256xf32>
    %8 = tpu.matmul %6, %7, %cst {dimension_numbers = #tpu.dot_dimension_numbers<[2], [1], [1], [2], [0, 0, 0, 1, 1, 2], [0], [0]>} : vector<2x4x4xf32>, vector<2x4x256xf32>, vector<2x4x256xf32> -> vector<2x4x256xf32>
    "tpu.trace_stop"() : () -> ()
    %c0_5 = arith.constant 0 : index
    %c0_6 = arith.constant 0 : index
    %c0_7 = arith.constant 0 : index
    %9 = vector.load %arg6[%c0_5, %c0_6, %c0_7] : memref<2x4x1xf32, #tpu.memory_space<vmem>>, vector<2x4x1xf32>
    %cst_8 = arith.constant dense<0xFF800000> : vector<2x4xf32>
    %10 = vector.multi_reduction <maximumf>, %8, %cst_8 [2] : vector<2x4x256xf32> to vector<2x4xf32>
    %11 = vector.shape_cast %10 : vector<2x4xf32> to vector<2x4x1xf32>
    %12 = arith.maximumf %9, %11 : vector<2x4x1xf32>
    %13 = arith.subf %9, %12 : vector<2x4x1xf32>
    %cst_9 = arith.constant 1.000000e+01 : f32
    %14 = vector.broadcast %cst_9 : f32 to vector<2x4x1xf32>
    %15 = arith.mulf %14, %13 : vector<2x4x1xf32>
    %16 = math.exp %15 : vector<2x4x1xf32>
    %17 = vector.broadcast %12 : vector<2x4x1xf32> to vector<2x4x256xf32>
    %18 = arith.subf %8, %17 : vector<2x4x256xf32>
    %cst_10 = arith.constant 1.000000e+01 : f32
    %19 = vector.broadcast %cst_10 : f32 to vector<2x4x256xf32>
    %20 = arith.mulf %19, %18 : vector<2x4x256xf32>
    %21 = math.exp %20 : vector<2x4x256xf32>
    %c0_11 = arith.constant 0 : index
    %c0_12 = arith.constant 0 : index
    %c0_13 = arith.constant 0 : index
    %22 = vector.load %arg7[%c0_11, %c0_12, %c0_13] : memref<2x4x1xf32, #tpu.memory_space<vmem>>, vector<2x4x1xf32>
    %23 = arith.mulf %16, %22 : vector<2x4x1xf32>
    %cst_14 = arith.constant dense<0.000000e+00> : vector<2x4xf32>
    %24 = vector.multi_reduction <add>, %21, %cst_14 [2] : vector<2x4x256xf32> to vector<2x4xf32>
    %25 = vector.shape_cast %24 : vector<2x4xf32> to vector<2x4x1xf32>
    %26 = arith.addf %23, %25 : vector<2x4x1xf32>
    %c0_15 = arith.constant 0 : index
    %c0_16 = arith.constant 0 : index
    %c0_17 = arith.constant 0 : index
    %27 = vector.load %arg7[%c0_15, %c0_16, %c0_17] : memref<2x4x1xf32, #tpu.memory_space<vmem>>, vector<2x4x1xf32>
    tpu.vector_store %arg7[%c0_15, %c0_16, %c0_17], %26 {strides = array<i32>} : memref<2x4x1xf32, #tpu.memory_space<vmem>>, vector<2x4x1xf32>,
    %c0_18 = arith.constant 0 : index
    %c0_19 = arith.constant 0 : index
    %c0_20 = arith.constant 0 : index
    %28 = vector.load %arg6[%c0_18, %c0_19, %c0_20] : memref<2x4x1xf32, #tpu.memory_space<vmem>>, vector<2x4x1xf32>
    tpu.vector_store %arg6[%c0_18, %c0_19, %c0_20], %12 {strides = array<i32>} : memref<2x4x1xf32, #tpu.memory_space<vmem>>, vector<2x4x1xf32>,
    %c0_i32_21 = arith.constant 0 : i32
    %29 = arith.cmpi eq, %arg1, %c0_i32_21 : i32
    %30 = arith.extui %29 : i1 to i32
    %c0_i32_22 = arith.constant 0 : i32
    %31 = arith.cmpi ne, %30, %c0_i32_22 : i32
    scf.if %31 {
      %c0_23 = arith.constant 0 : index
      %c0_24 = arith.constant 0 : index
      %c0_25 = arith.constant 0 : index
      %32 = vector.load %arg7[%c0_23, %c0_24, %c0_25] : memref<2x4x1xf32, #tpu.memory_space<vmem>>, vector<2x4x1xf32>
      %33 = math.log %32 : vector<2x4x1xf32>
      %cst_26 = arith.constant 5.54517746 : f32
      %34 = vector.broadcast %cst_26 : f32 to vector<2x4x1xf32>
      %35 = arith.subf %33, %34 : vector<2x4x1xf32>
      %cst_27 = arith.constant 1.000000e-01 : f32
      %36 = vector.broadcast %cst_27 : f32 to vector<2x4x1xf32>
      %37 = arith.mulf %35, %36 : vector<2x4x1xf32>
      %c0_28 = arith.constant 0 : index
      %c0_29 = arith.constant 0 : index
      %c0_30 = arith.constant 0 : index
      %38 = vector.load %arg6[%c0_28, %c0_29, %c0_30] : memref<2x4x1xf32, #tpu.memory_space<vmem>>, vector<2x4x1xf32>
      %39 = arith.addf %37, %38 : vector<2x4x1xf32>
      %c0_31 = arith.constant 0 : index
      %c0_32 = arith.constant 0 : index
      %40 = vector.load %arg4[%c0_31, %c0_32] : memref<4x1xf32, #tpu.memory_space<vmem>>, vector<4x1xf32>
      %41 = vector.shape_cast %40 : vector<4x1xf32> to vector<1x4x1xf32>
      %42 = vector.broadcast %41 : vector<1x4x1xf32> to vector<2x4x1xf32>
      %43 = arith.addf %39, %42 : vector<2x4x1xf32>
      %c0_33 = arith.constant 0 : index
      %c0_34 = arith.constant 0 : index
      %c0_35 = arith.constant 0 : index
      %44 = vector.load %arg5[%c0_33, %c0_34, %c0_35] : memref<2x4x1xf32, #tpu.memory_space<vmem>>, vector<2x4x1xf32>
      tpu.vector_store %arg5[%c0_33, %c0_34, %c0_35], %43 {strides = array<i32>} : memref<2x4x1xf32, #tpu.memory_space<vmem>>, vector<2x4x1xf32>,
    } else {
    }
    return
  }
  func.func @transform_0(%arg0: i32, %arg1: i32) -> (i32, i32, i32) {
    %c0_i32 = arith.constant 0 : i32
    %c0_i32_0 = arith.constant 0 : i32
    return %arg0, %c0_i32, %arg1 : i32, i32, i32
  }
  func.func @transform_1(%arg0: i32, %arg1: i32) -> (i32, i32) {
    %c0_i32 = arith.constant 0 : i32
    %c0_i32_0 = arith.constant 0 : i32
    %c0_i32_1 = arith.constant 0 : i32
    return %c0_i32, %c0_i32_0 : i32, i32
  }
  func.func @transform_2(%arg0: i32, %arg1: i32) -> (i32, i32) {
    %c0_i32 = arith.constant 0 : i32
    %c0_i32_0 = arith.constant 0 : i32
    %c0_i32_1 = arith.constant 0 : i32
    return %c0_i32, %c0_i32_0 : i32, i32
  }
  func.func @transform_3(%arg0: i32, %arg1: i32) -> (i32, i32, i32) {
    %c0_i32 = arith.constant 0 : i32
    %c0_i32_0 = arith.constant 0 : i32
    %c0_i32_1 = arith.constant 0 : i32
    return %arg0, %c0_i32, %c0_i32_0 : i32, i32, i32
  }
}

</mosaic_0001>

<bundles_post_ra>
// kernel: tpu_custom_call.1
= control target key start
LH: loop header
LB: loop body
LE: loop exit
PB: predicated region body
PF: predicated region fallthrough
CT: control target
= control target key end

     0   :  { %8 = vsyncpa [#allocation5], 0  ;;  %s299_s15 = smov [#allocation4]   ;;  %s300_s17 = smov 128   ;;  %s362_s0 = inlined_call_operand.hbm [shape: f32[2,4,256], index: 0, kind: input, shape index: {}]   ;;  %s363_s1 = inlined_call_operand.vmem [shape: f32[4,4], index: 1, kind: input, shape index: {}]   ;;  %s364_s2 = inlined_call_operand.vmem [shape: f32[4,1], index: 2, kind: input, shape index: {}]   ;;  %s365_s3 = inlined_call_operand.vmem [shape: f32[2,4,1], index: 3, kind: output, shape index: {}]  }
   0x1   :  { %s13_s14 = sshll.u32 %s362_s0, 4  ;;  %s15_s16 = sshll.u32 %s299_s15, 4  ;;  %s14_s14 = int_to_ptr.hbm [resolvable:$true] %s13_s14  ;;  %s16_s16 = int_to_ptr.vmem [resolvable:$true] %s15_s16 }
   0x2   :  { %s301_s18 = smov 8  }
   0x3   :  { %21 = dma.hbm_to_vmem [thread:$0]  %s14_s14, 256, %s16_s16, [#allocation5], %s300_s17, %s300_s17, %s301_s18  }
   0x4   :  { %297 = dma.done.wait [#allocation5], 256  }
   0x5   :  { %298 = vsyncadd [#allocation5], 4294967040  ;;  %v40_v0 = vld [vmem:[#allocation4] sm:$0xff]  ;;  %vm50_vm0 = vcmask 1043456   ;;  %v41_v1 = vld [vmem:[#allocation4 + $0x8] sm:$0xff]  ;;  %vm46_vm1 = vcmask 31744  }
   0x6   :  { %43 = vst [vmem:[#allocation1] ss:$2 sm:$0xff] %v40_v0  ;;  %v39_v2 = vld [vmem:[%s363_s1] sm:$0xf]  ;;  %vm34_vm2 = vcmask 3072   ;;  %v302_v7 = vmov -inf  }
   0x7   :  { %35 = vst.msk [vmem:[#allocation2] sm:$0xf] %vm34_vm2, %v302_v7  ;;  %v303_v18 = vmov 0   ;;  %v304_v19 = vmov 0.0  }
   0x8   :  { %36 = vst.msk [vmem:[#allocation2 + $0x4] sm:$0xf] %vm34_vm2, %v302_v7  ;;  %255 = vset.pattern.permute.xlu1 %v303_v18  ;;  %256 = vset.pattern.permute.xlu0 %v303_v18 }
   0x9   :  { %37 = vst.msk [vmem:[#allocation3] sm:$0xf] %vm34_vm2, %v304_v19 }
   0xa   :  { %38 = vst.msk [vmem:[#allocation3 + $0x4] sm:$0xf] %vm34_vm2, %v304_v19 }
   0xd   :  { %v44_v3 = vld.sshfl [vmem:[#allocation1] sm:$0xff pattern:$0x75316420]  ;;  %v45_v4 = vld.sshfl [vmem:[#allocation1 + $0x8] sm:$0xff pattern:$0x75316420] }
   0xe   :  { %239 = vmatpush.msk.msra.mxu0 %vm50_vm0, %v44_v3  ;;  %241 = vmatpush.msk.msra.mxu1 %vm50_vm0, %v45_v4  ;;  %96 = vst [vmem:[#allocation1] ss:$2 sm:$0xff] %v41_v1  ;;  %v143_v20 = vld [vmem:[#allocation2] sm:$0xf] }
   0xf   :  { %240 = vmatmul.msk.f32.vlgmr.msra.gmra.mxu0 %vm46_vm1, %v39_v2  ;;  %242 = vmatmul.msk.f32.vlgmr.msra.gmra.mxu1 %vm46_vm1, %v39_v2  ;;  %v144_v24 = vld [vmem:[#allocation2 + $0x4] sm:$0xf] }
  0x10   :  { %v191_v56 = vld [vmem:[#allocation3] sm:$0xf] }
  0x11   :  { %v192_v63 = vld [vmem:[#allocation3 + $0x4] sm:$0xf] }
  0x15   :  { %v97_v5 = vld.sshfl [vmem:[#allocation1] sm:$0xff pattern:$0x75316420]  ;;  %v98_v6 = vld.sshfl [vmem:[#allocation1 + $0x8] sm:$0xff pattern:$0x75316420] }
  0x16   :  { %243 = vmatpush.msk.msra.mxu2 %vm50_vm0, %v97_v5  ;;  %245 = vmatpush.msk.msra.mxu3 %vm50_vm0, %v98_v6 }
  0x17   :  { %244 = vmatmul.msk.f32.vlgmr.msra.gmra.mxu2 %vm46_vm1, %v39_v2  ;;  %246 = vmatmul.msk.f32.vlgmr.msra.gmra.mxu3 %vm46_vm1, %v39_v2 }
  0x8c   :  { %v72_v8 = vpop.f32.mrf.mxu0  ;;  %v92_v9 = vpop.f32.mrf.mxu1 }
  0x8d   :  { %v145_v10 = vsel %vm50_vm0, %v72_v8, -inf  ;;  %v146_v11 = vsel %vm50_vm0, %v92_v9, -inf }
  0x8e   :  { %v147_v12 = vmax.f32 %v145_v10, %v146_v11 }
  0x90   :  { %148 = vmax.xlane.f32.xlu0 %v147_v12 }
  0x9a   :  { %v120_v13 = vpop.f32.mrf.mxu2  ;;  %v140_v14 = vpop.f32.mrf.mxu3 }
  0x9b   :  { %v150_v15 = vsel %vm50_vm0, %v120_v13, -inf  ;;  %v151_v16 = vsel %vm50_vm0, %v140_v14, -inf }
  0x9c   :  { %v152_v17 = vmax.f32 %v150_v15, %v151_v16 }
  0x9e   :  { %153 = vmax.xlane.f32.xlu0 %v152_v17 }
 0x103   :  { %v149_v21 = vpop.xlane.xlu0 %148 }
 0x104   :  { %v155_v22 = vmax.f32 %v143_v20, %v149_v21 }
 0x106   :  { %v157_v23 = vsub.f32 %v143_v20, %v155_v22  ;;  %210 = vst.msk [vmem:[#allocation2] sm:$0xf] %vm34_vm2, %v155_v22  ;;  %167 = vperm.xlu1 %255, %v155_v22  }
 0x108   :  { %v159_v52 = vmul.f32 10.0, %v157_v23 }
 0x10a   :  { %v161_v53 = vmul.f32 1.442695, %v159_v52 }
 0x10d   :  { %v225_v7 = vld [vmem:[#allocation2] sm:$0xf] }
 0x111   :  { %v154_v25 = vpop.xlane.xlu0 %153 }
 0x112   :  { %v156_v26 = vmax.f32 %v144_v24, %v154_v25 }
 0x114   :  { %v158_v27 = vsub.f32 %v144_v24, %v156_v26  ;;  %211 = vst.msk [vmem:[#allocation2 + $0x4] sm:$0xf] %vm34_vm2, %v156_v26  ;;  %172 = vperm.xlu1 %255, %v156_v26  }
 0x116   :  { %v160_v55 = vmul.f32 10.0, %v158_v27 }
 0x118   :  { %v163_v58 = vmul.f32 1.442695, %v160_v55 }
 0x11b   :  { %v226_v16 = vld [vmem:[#allocation2 + $0x4] sm:$0xf] }
 0x178   :  { %v168_v28 = vpop.permute.xlu1 %167 }
 0x179   :  { %v175_v29 = vsub.f32 %v72_v8, %v168_v28  ;;  %v176_v30 = vsub.f32 %v92_v9, %v168_v28  ;;  %v229_v8 = vld [vmem:[%s364_s2] sm:$0xf] }
 0x17b   :  { %v179_v31 = vmul.f32 10.0, %v175_v29  ;;  %v180_v32 = vmul.f32 10.0, %v176_v30 }
 0x17d   :  { %v183_v33 = vmul.f32 1.442695, %v179_v31  ;;  %v185_v34 = vmul.f32 1.442695, %v180_v32 }
 0x17f   :  { %257 = vpow2.f32 %v183_v33 }
 0x180   :  { %259 = vpow2.f32 %v185_v34 }
 0x185   :  { %v258_v35 = vpop.eup %257 }
 0x186   :  { %v260_v36 = vpop.eup %259  ;;  %v173_v37 = vpop.permute.xlu1 %172  ;;  %v195_v38 = vsel %vm50_vm0, %v258_v35, 0.0 }
 0x187   :  { %v177_v39 = vsub.f32 %v120_v13, %v173_v37  ;;  %v178_v40 = vsub.f32 %v140_v14, %v173_v37  ;;  %v196_v41 = vsel %vm50_vm0, %v260_v36, 0.0 }
 0x188   :  { %v197_v42 = vadd.f32 %v196_v41, %v195_v38 }
 0x189   :  { %v181_v43 = vmul.f32 10.0, %v177_v39  ;;  %v182_v44 = vmul.f32 10.0, %v178_v40 }
 0x18a   :  { %198 = vadd.xlane.f32.xlu2 %v197_v42 }
 0x18b   :  { %v187_v45 = vmul.f32 1.442695, %v181_v43  ;;  %v189_v46 = vmul.f32 1.442695, %v182_v44 }
 0x18d   :  { %261 = vpow2.f32 %v187_v45 }
 0x18e   :  { %263 = vpow2.f32 %v189_v46 }
 0x18f   :  { %265 = vpow2.f32 %v161_v53 }
 0x190   :  { %267 = vpow2.f32 %v163_v58 }
 0x193   :  { %v262_v47 = vpop.eup %261 }
 0x194   :  { %v264_v48 = vpop.eup %263  ;;  %v200_v49 = vsel %vm50_vm0, %v262_v47, 0.0 }
 0x195   :  { %v201_v50 = vsel %vm50_vm0, %v264_v48, 0.0  ;;  %v266_v54 = vpop.eup %265 }
 0x196   :  { %v202_v51 = vadd.f32 %v201_v50, %v200_v49  ;;  %v193_v57 = vmul.f32 %v266_v54, %v191_v56  ;;  %v268_v61 = vpop.eup %267 }
 0x197   :  { %v194_v0 = vmul.f32 %v268_v61, %v192_v63 }
 0x198   :  { %203 = vadd.xlane.f32.xlu2 %v202_v51 }
 0x1fd   :  { %v199_v59 = vpop.xlane.xlu2 %198 }
 0x1fe   :  { %v205_v60 = vadd.f32 %v199_v59, %v193_v57 }
 0x200   :  { %208 = vst.msk [vmem:[#allocation3] sm:$0xf] %vm34_vm2, %v205_v60 }
 0x207   :  { %v215_v62 = vld [vmem:[#allocation3] sm:$0xf] }
 0x208   :  { %269 = vlog2.f32 %v215_v62 }
 0x20b   :  { %v204_v1 = vpop.xlane.xlu2 %203 }
 0x20c   :  { %v206_v2 = vadd.f32 %v204_v1, %v194_v0 }
 0x20e   :  { %v270_v3 = vpop.eup %269  ;;  %209 = vst.msk [vmem:[#allocation3 + $0x4] sm:$0xf] %vm34_vm2, %v206_v2 }
 0x20f   :  { %v218_v4 = vmul.f32 0.6931472, %v270_v3 }
 0x211   :  { %v247_v5 = vadd.f32 -5.5451775, %v218_v4 }
 0x213   :  { %v223_v6 = vmul.f32 0.1, %v247_v5 }
 0x215   :  { %v227_v9 = vadd.f32 %v225_v7, %v223_v6  ;;  %v216_v10 = vld [vmem:[#allocation3 + $0x4] sm:$0xf] }
 0x216   :  { %271 = vlog2.f32 %v216_v10 }
 0x217   :  { %v230_v11 = vadd.f32 %v229_v8, %v227_v9 }
 0x219   :  { %232 = vst.msk [vmem:[%s365_s3] sm:$0xf] %vm34_vm2, %v230_v11 }
 0x21c   :  { %v272_v12 = vpop.eup %271 }
 0x21d   :  { %v220_v13 = vmul.f32 0.6931472, %v272_v12 }
 0x21f   :  { %v248_v14 = vadd.f32 -5.5451775, %v220_v13 }
 0x221   :  { %v224_v15 = vmul.f32 0.1, %v248_v14 }
 0x223   :  { %v228_v17 = vadd.f32 %v226_v16, %v224_v15 }
 0x225   :  { %v231_v18 = vadd.f32 %v229_v8, %v228_v17 }
 0x227   :  { %233 = vst.msk [vmem:[%s365_s3 + $0x4] sm:$0xf] %vm34_vm2, %v231_v18 }
 0x228   :  { %238 = vsyncpa [#allocation5], 1 }

</bundles_post_ra>
